<compile_context>
chip_gen: v6e
topology: v6e:2x2x1
jax: 0.10.0
libtpu: 0.0.40
codegen_flags: <defaults>
</compile_context>

<pallas_src>
import functools

import jax
import jax.numpy as jnp
from jax.experimental import pallas as pl
from jax.experimental.pallas import tpu as pltpu


def rbfn_kernel(nb_ref, x_ref, ct_ref, c2_ref, w_ref, b_ref, o_ref):
    # nb_ref : (1, 1)   SMEM  -beta
    # x_ref  : (TN, D)  VMEM  input rows (streamed / tiled over N)
    # ct_ref : (D, C)   VMEM  2*beta * centers.T     (grid-resident)
    # c2_ref : (1, C)   VMEM  -beta * ||c||^2        (grid-resident)
    # w_ref  : (C, O)   VMEM  linear weight.T        (grid-resident)
    # b_ref  : (1, O)   VMEM  bias                   (grid-resident)
    # o_ref  : (TN, O)  VMEM  output rows
    x = x_ref[...]
    neg_beta = nb_ref[0, 0]

    # -beta * ||x||^2 per row (depends on the x tile, so stays in-kernel).
    x2 = neg_beta * jnp.sum(x * x, axis=-1, keepdims=True)               # (TN, 1)

    # 2*beta * x . c on the MXU (2*beta already folded into ct).
    xc = jnp.dot(x, ct_ref[...], preferred_element_type=jnp.float32)     # (TN, C)

    # exponent = -beta * d2 ; clamp <= 0 (assumes beta > 0) to absorb
    # round-off from the ||x||^2 + ||c||^2 - 2 x.c expansion and to keep
    # garbage rows of a ragged last tile finite (those rows are masked on store).
    expnt = jnp.minimum(xc + c2_ref[...] + x2, 0.0)
    phi = jnp.exp(expnt)                                                  # (TN, C) EUP

    o_ref[...] = (
        jnp.dot(phi, w_ref[...], preferred_element_type=jnp.float32) + b_ref[...]
    )


def _round_up(v, m):
    return ((v + m - 1) // m) * m


@functools.partial(jax.jit, static_argnames=("tile_n",))
def rbfn_forward(x, centers, beta, w, b, *, tile_n=None):
    """RBFN forward: exp(-beta * cdist(x, centers)**2) @ W.T + b.

    x: (N, D) f32; centers: (C, D); beta: (1,); w: (O, C); b: (O,).
    """
    x = x.astype(jnp.float32)
    N, D = x.shape
    C = centers.shape[0]
    O = w.shape[0]

    # ---- row-tile selection -------------------------------------------------
    if tile_n is None:
        # Big tiles amortise the ~0.35 us/step pipeline overhead, but keep
        # ~4 grid steps when N allows so the "parallel" axis can shard across
        # both TensorCores on v7x (no-op on single-TC v5e/v6e).
        tile_n = max(256, min(4096, pl.cdiv(N, 4)))
    TN = max(8, _round_up(min(tile_n, max(N, 8)), 8))
    grid = (pl.cdiv(N, TN),)            # ragged last block: Pallas masks stores

    # ---- parameter prep (invariant across calls; fused / CSE'd under jit) ---
    beta_s = beta.reshape(()).astype(jnp.float32)
    neg_beta = jnp.reshape(-beta_s, (1, 1))
    centers32 = centers.astype(jnp.float32)
    ct_scaled = (2.0 * beta_s) * centers32.T                              # (D, C)
    c2_scaled = (-beta_s) * jnp.sum(centers32 * centers32, axis=-1,
                                    keepdims=True).T                      # (1, C)
    wt = w.astype(jnp.float32).T                                          # (C, O)
    b_row = b.astype(jnp.float32)[None, :]                                # (1, O)

    # ---- VMEM budget ----------------------------------------------------------
    # f32 tiles occupy lane/sublane-padded footprints: last dim rounds up to
    # 128 lanes, second-to-last to 8 sublanes.
    lane = lambda n: _round_up(n, 128)
    sub = lambda n: _round_up(n, 8)
    # double-buffered streamed x + out tiles, plus (TN, <=128)-lane
    # intermediates (xc, phi, exponent, x2) the compiler materialises.
    tile_bytes = 4 * TN * (2 * lane(D) + 2 * lane(O) + 4 * lane(C))
    resident_bytes = 4 * 2 * (sub(D) * lane(C) + sub(1) * lane(C)
                              + sub(C) * lane(O) + sub(1) * lane(O))
    try:
        phys_vmem = pltpu.get_tpu_info().vmem_capacity_bytes
    except Exception:  # conservative fallback (v7x per-TC VMEM)
        phys_vmem = 64 << 20
    vmem_limit = int(min(max(2 * (tile_bytes + resident_bytes), 16 << 20),
                         int(0.75 * phys_vmem)))

    out = pl.pallas_call(
        rbfn_kernel,
        out_shape=jax.ShapeDtypeStruct((N, O), jnp.float32),
        grid=grid,
        in_specs=[
            pl.BlockSpec((1, 1), lambda i: (0, 0),
                         memory_space=pltpu.MemorySpace.SMEM),            # -beta
            pl.BlockSpec((TN, D), lambda i: (i, 0)),                      # x rows
            pl.BlockSpec((D, C), lambda i: (0, 0)),                       # 2b*C.T
            pl.BlockSpec((1, C), lambda i: (0, 0)),                       # -b*||c||^2
            pl.BlockSpec((C, O), lambda i: (0, 0)),                       # W.T
            pl.BlockSpec((1, O), lambda i: (0, 0)),                       # bias
        ],
        out_specs=pl.BlockSpec((TN, O), lambda i: (i, 0)),
        compiler_params=pltpu.CompilerParams(
            dimension_semantics=("parallel",),
            vmem_limit_bytes=vmem_limit,
        ),
    )(neg_beta, x, ct_scaled, c2_scaled, wt, b_row)

    return out


def _reference(x, centers, beta, w, b):
    d2 = jnp.sum((x[:, None, :] - centers[None, :, :]) ** 2, axis=-1)
    phi = jnp.exp(-beta[0] * d2)
    return phi @ w.T + b


if __name__ == "__main__":
    # Small deterministic shapes consistent with the module.
    input_dim, num_centers, output_dim = 16, 10, 4

    key = jax.random.PRNGKey(0)
    k_x, k_c, k_w, k_b, k_x2 = jax.random.split(key, 5)

    # Parameters (deterministic synthetic init, mirroring __init__ shapes).
    centers = jax.random.normal(k_c, (num_centers, input_dim), dtype=jnp.float32)
    beta = jnp.ones((1,), dtype=jnp.float32) * 2.0
    bound = 1.0 / jnp.sqrt(jnp.float32(num_centers))
    w = jax.random.uniform(k_w, (output_dim, num_centers), jnp.float32, -bound, bound)
    b = jax.random.uniform(k_b, (output_dim,), jnp.float32, -bound, bound)

    def standardize(x_raw):
        mean = jnp.mean(x_raw, axis=0, keepdims=True)
        std = jnp.std(x_raw, axis=0, keepdims=True) + 1e-8
        return (x_raw - mean) / std

    ok = True

    # Case 1: tiny batch (single grid step, default tile).
    N1 = 8
    x1 = standardize(
        jax.random.normal(k_x, (N1, input_dim), dtype=jnp.float32) * 3.0 + 1.0)
    out1 = jax.block_until_ready(rbfn_forward(x1, centers, beta, w, b))
    ref1 = _reference(x1, centers, beta, w, b)
    ok &= out1.shape == (N1, output_dim)
    ok &= bool(jnp.allclose(out1, ref1, atol=1e-5, rtol=1e-4))

    # Case 2: larger, non-tile-aligned batch (exercises multi-step grid and
    # the ragged last block with masked stores).
    N2 = 1000
    x2 = standardize(
        jax.random.normal(k_x2, (N2, input_dim), dtype=jnp.float32) * 2.0 - 0.5)
    out2 = jax.block_until_ready(rbfn_forward(x2, centers, beta, w, b, tile_n=256))
    ref2 = _reference(x2, centers, beta, w, b)
    ok &= out2.shape == (N2, output_dim)
    ok &= bool(jnp.allclose(out2, ref2, atol=1e-5, rtol=1e-4))

    assert ok, "RBFN Pallas kernel mismatch vs reference"
    print("KERNEL_OK")
</pallas_src>

<mosaic_0001>
module attributes {stable_mosaic.version = 11 : i64} {
  func.func @rbfn_kernel(%arg0: i32, %arg1: memref<1x1xf32, #tpu.memory_space<smem>>, %arg2: memref<8x16xf32, #tpu.memory_space<vmem>>, %arg3: memref<16x10xf32, #tpu.memory_space<vmem>>, %arg4: memref<1x10xf32, #tpu.memory_space<vmem>>, %arg5: memref<10x4xf32, #tpu.memory_space<vmem>>, %arg6: memref<1x4xf32, #tpu.memory_space<vmem>>, %arg7: memref<8x4xf32, #tpu.memory_space<vmem>>) attributes {dimension_semantics = [#tpu.dimension_semantics<parallel>], iteration_bounds = array<i64: 1>, scalar_prefetch = 0 : i64, scratch_operands = 0 : i64, tpu.core_type = #tpu.core_type<tc>, window_params = [{transform_indices = @transform_0, window_bounds = array<i64: 1, 1>}, {transform_indices = @transform_1, window_bounds = array<i64: 8, 16>}, {pipeline_mode = #tpu.pipeline_mode<synchronous>, transform_indices = @transform_2, window_bounds = array<i64: 16, 10>}, {pipeline_mode = #tpu.pipeline_mode<synchronous>, transform_indices = @transform_3, window_bounds = array<i64: 1, 10>}, {pipeline_mode = #tpu.pipeline_mode<synchronous>, transform_indices = @transform_4, window_bounds = array<i64: 10, 4>}, {pipeline_mode = #tpu.pipeline_mode<synchronous>, transform_indices = @transform_5, window_bounds = array<i64: 1, 4>}, {transform_indices = @transform_6, window_bounds = array<i64: 8, 4>}]} {
    %c0 = arith.constant 0 : index
    %c0_0 = arith.constant 0 : index
    %0 = vector.load %arg2[%c0, %c0_0] : memref<8x16xf32, #tpu.memory_space<vmem>>, vector<8x16xf32>
    %c0_1 = arith.constant 0 : index
    %c0_2 = arith.constant 0 : index
    %1 = memref.load %arg1[%c0_1, %c0_2] : memref<1x1xf32, #tpu.memory_space<smem>>
    %2 = arith.mulf %0, %0 : vector<8x16xf32>
    %cst = arith.constant dense<0.000000e+00> : vector<8xf32>
    %3 = vector.multi_reduction <add>, %2, %cst [1] : vector<8x16xf32> to vector<8xf32>
    %4 = vector.shape_cast %3 : vector<8xf32> to vector<8x1xf32>
    %5 = vector.broadcast %1 : f32 to vector<8x1xf32>
    %6 = arith.mulf %5, %4 : vector<8x1xf32>
    %c0_3 = arith.constant 0 : index
    %c0_4 = arith.constant 0 : index
    %7 = vector.load %arg3[%c0_3, %c0_4] : memref<16x10xf32, #tpu.memory_space<vmem>>, vector<16x10xf32>
    %cst_5 = arith.constant dense<0.000000e+00> : vector<8x10xf32>
    %8 = tpu.matmul %0, %7, %cst_5 {dimension_numbers = #tpu.dot_dimension_numbers<[1], [0], [0], [1], [0, 0, 1, 1], [], []>} : vector<8x16xf32>, vector<16x10xf32>, vector<8x10xf32> -> vector<8x10xf32>
    %c0_6 = arith.constant 0 : index
    %c0_7 = arith.constant 0 : index
    %9 = vector.load %arg4[%c0_6, %c0_7] : memref<1x10xf32, #tpu.memory_space<vmem>>, vector<1x10xf32>
    %10 = vector.broadcast %9 : vector<1x10xf32> to vector<8x10xf32>
    %11 = arith.addf %8, %10 : vector<8x10xf32>
    %12 = vector.broadcast %6 : vector<8x1xf32> to vector<8x10xf32>
    %13 = arith.addf %11, %12 : vector<8x10xf32>
    %cst_8 = arith.constant 0.000000e+00 : f32
    %14 = vector.broadcast %cst_8 : f32 to vector<8x10xf32>
    %15 = arith.minimumf %13, %14 : vector<8x10xf32>
    %16 = math.exp %15 : vector<8x10xf32>
    %c0_9 = arith.constant 0 : index
    %c0_10 = arith.constant 0 : index
    %17 = vector.load %arg5[%c0_9, %c0_10] : memref<10x4xf32, #tpu.memory_space<vmem>>, vector<10x4xf32>
    %cst_11 = arith.constant dense<0.000000e+00> : vector<8x4xf32>
    %18 = tpu.matmul %16, %17, %cst_11 {dimension_numbers = #tpu.dot_dimension_numbers<[1], [0], [0], [1], [0, 0, 1, 1], [], []>} : vector<8x10xf32>, vector<10x4xf32>, vector<8x4xf32> -> vector<8x4xf32>
    %c0_12 = arith.constant 0 : index
    %c0_13 = arith.constant 0 : index
    %19 = vector.load %arg6[%c0_12, %c0_13] : memref<1x4xf32, #tpu.memory_space<vmem>>, vector<1x4xf32>
    %20 = vector.broadcast %19 : vector<1x4xf32> to vector<8x4xf32>
    %21 = arith.addf %18, %20 : vector<8x4xf32>
    %c0_14 = arith.constant 0 : index
    %c0_15 = arith.constant 0 : index
    %22 = vector.load %arg7[%c0_14, %c0_15] : memref<8x4xf32, #tpu.memory_space<vmem>>, vector<8x4xf32>
    tpu.vector_store %arg7[%c0_14, %c0_15], %21 {strides = array<i32>} : memref<8x4xf32, #tpu.memory_space<vmem>>, vector<8x4xf32>,
    return
  }
  func.func @transform_0(%arg0: i32) -> (i32, i32) {
    %c0_i32 = arith.constant 0 : i32
    %c0_i32_0 = arith.constant 0 : i32
    %c0_i32_1 = arith.constant 0 : i32
    return %c0_i32, %c0_i32_0 : i32, i32
  }
  func.func @transform_1(%arg0: i32) -> (i32, i32) {
    %c0_i32 = arith.constant 0 : i32
    %c0_i32_0 = arith.constant 0 : i32
    return %arg0, %c0_i32 : i32, i32
  }
  func.func @transform_2(%arg0: i32) -> (i32, i32) {
    %c0_i32 = arith.constant 0 : i32
    %c0_i32_0 = arith.constant 0 : i32
    %c0_i32_1 = arith.constant 0 : i32
    return %c0_i32, %c0_i32_0 : i32, i32
  }
  func.func @transform_3(%arg0: i32) -> (i32, i32) {
    %c0_i32 = arith.constant 0 : i32
    %c0_i32_0 = arith.constant 0 : i32
    %c0_i32_1 = arith.constant 0 : i32
    return %c0_i32, %c0_i32_0 : i32, i32
  }
  func.func @transform_4(%arg0: i32) -> (i32, i32) {
    %c0_i32 = arith.constant 0 : i32
    %c0_i32_0 = arith.constant 0 : i32
    %c0_i32_1 = arith.constant 0 : i32
    return %c0_i32, %c0_i32_0 : i32, i32
  }
  func.func @transform_5(%arg0: i32) -> (i32, i32) {
    %c0_i32 = arith.constant 0 : i32
    %c0_i32_0 = arith.constant 0 : i32
    %c0_i32_1 = arith.constant 0 : i32
    return %c0_i32, %c0_i32_0 : i32, i32
  }
  func.func @transform_6(%arg0: i32) -> (i32, i32) {
    %c0_i32 = arith.constant 0 : i32
    %c0_i32_0 = arith.constant 0 : i32
    return %arg0, %c0_i32 : i32, i32
  }
}

</mosaic_0001>

<bundles_post_ra>
// kernel: rbfn_forward.1
= control target key start
LH: loop header
LB: loop body
LE: loop exit
PB: predicated region body
PF: predicated region fallthrough
CT: control target
= control target key end

     0   :  { %v241_v0 = vmov 0.0   ;;  %vm242_vm0 = vmmov 0   ;;  %vm27_vm1 = vcmask 130048   ;;  %vm132_vm2 = vcmask 1041408   ;;  %s305_s2 = inlined_call_operand.vmem [shape: f32[16,10], index: 2, kind: input, shape index: {}]   ;;  %s306_s1 = inlined_call_operand.vmem [shape: f32[8,16], index: 1, kind: input, shape index: {}]   ;;  %s307_s4 = inlined_call_operand.vmem [shape: f32[10,4], index: 4, kind: input, shape index: {}]   ;;  %s308_s0 = inlined_call_operand.<no memory space> [shape: f32[1,1], index: 0, kind: input, shape index: {}]   ;;  %s309_s3 = inlined_call_operand.vmem [shape: f32[1,10], index: 3, kind: input, shape index: {}]   ;;  %s310_s5 = inlined_call_operand.vmem [shape: f32[1,4], index: 5, kind: input, shape index: {}]   ;;  %s311_s6 = inlined_call_operand.vmem [shape: f32[8,4], index: 6, kind: output, shape index: {}]  }
   0x1   :  { %223 = vmatprep.subr.mxu0 %v241_v0  ;;  %v34_v1 = vld [vmem:[%s305_s2 + $0x8] sm:$0xff]  ;;  %v33_v2 = vld [vmem:[%s305_s2] sm:$0xff]  ;;  %227 = vmatprep.mubr.msk.f32.mxu0 %vm242_vm0, %v241_v0  ;;  %v31_v9 = vstv %s308_s0  ;;  %vm128_vm3 = vcmask 80896   ;;  %vm206_vm4 = vcmask 31744  }
   0x2   :  { %v24_v3 = vld [vmem:[%s306_s1] sm:$0xff]  ;;  %224 = vmatpush3.msra.mxu0 %v34_v1  ;;  %230 = vmatprep.subr.mxu1 %v241_v0  ;;  %v120_v6 = vld [vmem:[%s307_s4 + $0x8] sm:$0x3] }
   0x3   :  { %v26_v4 = vmul.f32 %v24_v3, %v24_v3  ;;  %225 = vmatprep.subr.mxu0 %v241_v0  ;;  %234 = vmatprep.mubr.msk.f32.mxu1 %vm242_vm0, %v241_v0  ;;  %v119_v7 = vld [vmem:[%s307_s4] sm:$0xff] }
   0x4   :  { %226 = vmatpush3.msra.mxu0 %v33_v2  ;;  %231 = vmatpush3.msk.msra.mxu1 %vm132_vm2, %v120_v6  ;;  %v212_v10 = vld [vmem:[%s309_s3] ss:$0 sm:$0xff] }
   0x5   :  { %v28_v5 = vsel %vm27_vm1, %v26_v4, 0.0  ;;  %228 = vmatmul.mubr.msk.f32.vlgmr.msra.gmra.mxu0 %vm27_vm1, %v24_v3  ;;  %232 = vmatprep.subr.mxu1 %v241_v0  ;;  %v214_v19 = vld [vmem:[%s310_s5] ss:$0 sm:$0xff] }
   0x6   :  { %29 = vadd.xlane.f32.xlu0 %v28_v5  ;;  %233 = vmatpush3.msra.mxu1 %v119_v7 }
  0x8f   :  { %v30_v8 = vpop.xlane.xlu0 %29 }
  0x90   :  { %v32_v11 = vmul.f32 %v31_v9, %v30_v8 }
  0xc5   :  { %v111_v12 = vpop.f32.mrf.mxu0 }
  0xc6   :  { %v112_v13 = vadd.f32 %v212_v10, %v111_v12 }
  0xc7   :  { %v229_v14 = vpop.f32.mrf.mxu0 }
  0xc8   :  { %v115_v15 = vadd.f32 %v112_v13, %v32_v11 }
  0xca   :  { %v116_v16 = vmin.f32 %v115_v15, 0.0 }
  0xcc   :  { %v117_v17 = vmul.f32 1.442695, %v116_v16 }
  0xce   :  { %239 = vpow2.f32 %v117_v17 }
  0xdb   :  { %v240_v18 = vpop.eup %239 }
  0xdc   :  { %235 = vmatmul.mubr.msk.f32.vlgmr.msra.gmra.mxu1 %vm128_vm3, %v240_v18 }
 0x19c   :  { %v202_v20 = vpop.f32.mrf.mxu1 }
 0x19d   :  { %v203_v21 = vadd.f32 %v214_v19, %v202_v20 }
 0x19e   :  { %v236_v22 = vpop.f32.mrf.mxu1 }
 0x19f   :  { %207 = vst.msk [vmem:[%s311_s6] sm:$0xff] %vm206_vm4, %v203_v21 }

</bundles_post_ra>
